<compile_context>
chip_gen: v6e
topology: v6e:2x2x1
jax: 0.10.0
libtpu: 0.0.40
codegen_flags: <defaults>
</compile_context>

<pallas_src>
import jax
import jax.numpy as jnp
from jax.experimental import pallas as pl
from jax.experimental.pallas import tpu as pltpu

IN_F = 784      # 28*28
HID = 16        # real hidden width
OUT = 10        # real output width
H_PAD = 128     # hidden padded to full lane width
O_PAD = 128     # output padded to full lane width
NEG_INF = -1e30
TB_MAX = 2048   # batch tile rows (multiple of 8); ~18 MiB double-buffered VMEM
VMEM_LIMIT_BYTES = 32 * 1024 * 1024


def net2_kernel(x_ref, w1_ref, b1_ref, w2_ref, b2_ref, out_ref):
    # x_ref: (TB, 784) input dtype      w1_ref: (784, 128)   b1_ref: (1, 128) f32
    # w2_ref: (128, 128)                b2_ref: (1, 128) f32 out_ref: (TB, 128) f32
    # Cast x in VMEM to the matmul operand dtype (f32 by default, bf16 if the
    # caller prepared bf16 weights) -- no wrapper-side astype materialization.
    x = x_ref[...].astype(w1_ref.dtype)

    # fc1 + tanh.  Padded hidden columns have zero weights & bias -> tanh(0)=0.
    h1 = jnp.tanh(
        jnp.dot(x, w1_ref[...], preferred_element_type=jnp.float32) + b1_ref[...]
    )

    # fc2.  Padded w2 rows are zero (no contribution from padded hidden lanes);
    # padded output lanes get bias -1e30 so they vanish in the softmax below.
    h2 = jnp.dot(h1.astype(w2_ref.dtype), w2_ref[...],
                 preferred_element_type=jnp.float32) + b2_ref[...]

    # Numerically-stable log_softmax along the lane (feature) axis.
    m = jnp.max(h2, axis=1, keepdims=True)
    shifted = h2 - m
    lse = jnp.log(jnp.sum(jnp.exp(shifted), axis=1, keepdims=True))
    out_ref[...] = (shifted - lse).astype(out_ref.dtype)


def prepare_net2_params(w1, b1, w2, b2, *, matmul_dtype=jnp.float32):
    """One-time parameter prep (hoisted out of the per-call forward).

    PyTorch stores Linear weights as (out_features, in_features); we transpose
    to (in, out), zero-pad the hidden dim 16->128, zero-pad w2's output columns
    10->128, and set the padded output biases to -1e30.  matmul_dtype=bf16 is a
    perf option for v6e/v7x (keeps the MXU hidden under DMA); accumulation and
    biases stay f32 either way.
    """
    w1_t = (jnp.zeros((IN_F, H_PAD), jnp.float32)
            .at[:, :HID].set(jnp.asarray(w1, jnp.float32).T)
            .astype(matmul_dtype))
    b1_p = jnp.zeros((1, H_PAD), jnp.float32).at[0, :HID].set(
        jnp.asarray(b1, jnp.float32))
    w2_t = (jnp.zeros((H_PAD, O_PAD), jnp.float32)
            .at[:HID, :OUT].set(jnp.asarray(w2, jnp.float32).T)
            .astype(matmul_dtype))
    b2_p = jnp.full((1, O_PAD), NEG_INF, jnp.float32).at[0, :OUT].set(
        jnp.asarray(b2, jnp.float32))
    return w1_t, b1_p, w2_t, b2_p


def _round_up(x, m):
    return ((x + m - 1) // m) * m


def net2_forward(x_nchw, prepared_params):
    """Forward pass of Net2.  x_nchw: (B, 1, 28, 28), any float dtype (the cast
    happens inside the kernel, so storing x in bf16 halves the HBM-read term)."""
    w1_t, b1_p, w2_t, b2_p = prepared_params
    B = x_nchw.shape[0]
    # x.view(-1, 784): pure reshape, keeps the input dtype.
    x_flat = x_nchw.reshape(B, IN_F)

    # Batch tile:
    #  * target >= 2 grid steps so the "parallel" axis feeds both v7x TCs,
    #  * cap at TB_MAX to amortize per-step overhead without blowing VMEM,
    #  * NO jnp.pad: the last block may be ragged (out-of-bounds output rows
    #    are discarded by Pallas; garbage padded input rows only affect those
    #    discarded rows since the computation is row-independent).
    TB = min(TB_MAX, max(8, _round_up((B + 1) // 2, 8)))
    if TB >= B:
        TB = B          # one full-batch block; block_shape == array dim is always legal
    n_tiles = pl.cdiv(B, TB)

    vmem = pltpu.MemorySpace.VMEM
    out = pl.pallas_call(
        net2_kernel,
        out_shape=jax.ShapeDtypeStruct((B, O_PAD), jnp.float32),
        grid=(n_tiles,),
        in_specs=[
            pl.BlockSpec((TB, IN_F), lambda i: (i, 0), memory_space=vmem),
            pl.BlockSpec((IN_F, H_PAD), lambda i: (0, 0), memory_space=vmem),
            pl.BlockSpec((1, H_PAD), lambda i: (0, 0), memory_space=vmem),
            pl.BlockSpec((H_PAD, O_PAD), lambda i: (0, 0), memory_space=vmem),
            pl.BlockSpec((1, O_PAD), lambda i: (0, 0), memory_space=vmem),
        ],
        out_specs=pl.BlockSpec((TB, O_PAD), lambda i: (i, 0), memory_space=vmem),
        compiler_params=pltpu.CompilerParams(
            dimension_semantics=("parallel",),
            vmem_limit_bytes=VMEM_LIMIT_BYTES),
    )(x_flat, w1_t, b1_p, w2_t, b2_p)

    # Drop the 118 padded logit lanes (cheap XLA slice).  Padded lanes hold
    # ~-1e30 and must never be consumed without this slice.
    return out[:, :OUT]


if __name__ == "__main__":
    key = jax.random.PRNGKey(0)
    k_x, k_w1, k_b1, k_w2, k_b2 = jax.random.split(key, 5)

    B = 2
    # MNIST-shaped input, NCHW like the PyTorch module expects.
    x = jax.random.normal(k_x, (B, 1, 28, 28), dtype=jnp.float32)

    # Deterministic parameter init (PyTorch Linear shapes: (out, in) and (out,)).
    bound1 = 1.0 / (784.0 ** 0.5)
    w1 = jax.random.uniform(k_w1, (HID, IN_F), jnp.float32, -bound1, bound1)
    b1 = jax.random.uniform(k_b1, (HID,), jnp.float32, -bound1, bound1)
    bound2 = 1.0 / (16.0 ** 0.5)
    w2 = jax.random.uniform(k_w2, (OUT, HID), jnp.float32, -bound2, bound2)
    b2 = jax.random.uniform(k_b2, (OUT,), jnp.float32, -bound2, bound2)

    params = prepare_net2_params(w1, b1, w2, b2)  # one-time prep, f32 matmuls
    out = net2_forward(x, params)
    out = jax.block_until_ready(out)

    # Sanity check vs pure-JAX reference of the same math.
    x_flat = x.reshape(B, IN_F)
    h1 = jnp.tanh(x_flat @ w1.T + b1)
    h2 = h1 @ w2.T + b2
    ref = jax.nn.log_softmax(h2, axis=1)
    assert out.shape == (B, OUT)
    assert jnp.allclose(out, ref, atol=1e-5, rtol=1e-5)

    print("KERNEL_OK")
</pallas_src>

<mosaic_0001>
module attributes {stable_mosaic.version = 11 : i64} {
  func.func @net2_kernel(%arg0: i32, %arg1: memref<2x784xf32, #tpu.memory_space<vmem>>, %arg2: memref<784x128xf32, #tpu.memory_space<vmem>>, %arg3: memref<1x128xf32, #tpu.memory_space<vmem>>, %arg4: memref<128x128xf32, #tpu.memory_space<vmem>>, %arg5: memref<1x128xf32, #tpu.memory_space<vmem>>, %arg6: memref<2x128xf32, #tpu.memory_space<vmem>>) attributes {dimension_semantics = [#tpu.dimension_semantics<parallel>], iteration_bounds = array<i64: 1>, scalar_prefetch = 0 : i64, scratch_operands = 0 : i64, tpu.core_type = #tpu.core_type<tc>, window_params = [{transform_indices = @transform_0, window_bounds = array<i64: 2, 784>}, {pipeline_mode = #tpu.pipeline_mode<synchronous>, transform_indices = @transform_1, window_bounds = array<i64: 784, 128>}, {pipeline_mode = #tpu.pipeline_mode<synchronous>, transform_indices = @transform_2, window_bounds = array<i64: 1, 128>}, {pipeline_mode = #tpu.pipeline_mode<synchronous>, transform_indices = @transform_3, window_bounds = array<i64: 128, 128>}, {pipeline_mode = #tpu.pipeline_mode<synchronous>, transform_indices = @transform_4, window_bounds = array<i64: 1, 128>}, {transform_indices = @transform_5, window_bounds = array<i64: 2, 128>}]} {
    %c0 = arith.constant 0 : index
    %c0_0 = arith.constant 0 : index
    %0 = vector.load %arg1[%c0, %c0_0] : memref<2x784xf32, #tpu.memory_space<vmem>>, vector<2x784xf32>
    %c0_1 = arith.constant 0 : index
    %c0_2 = arith.constant 0 : index
    %1 = vector.load %arg2[%c0_1, %c0_2] : memref<784x128xf32, #tpu.memory_space<vmem>>, vector<784x128xf32>
    %cst = arith.constant dense<0.000000e+00> : vector<2x128xf32>
    %2 = tpu.matmul %0, %1, %cst {dimension_numbers = #tpu.dot_dimension_numbers<[1], [0], [0], [1], [0, 0, 1, 1], [], []>} : vector<2x784xf32>, vector<784x128xf32>, vector<2x128xf32> -> vector<2x128xf32>
    %c0_3 = arith.constant 0 : index
    %c0_4 = arith.constant 0 : index
    %3 = vector.load %arg3[%c0_3, %c0_4] : memref<1x128xf32, #tpu.memory_space<vmem>>, vector<1x128xf32>
    %4 = vector.broadcast %3 : vector<1x128xf32> to vector<2x128xf32>
    %5 = arith.addf %2, %4 : vector<2x128xf32>
    %6 = math.tanh %5 : vector<2x128xf32>
    %c0_5 = arith.constant 0 : index
    %c0_6 = arith.constant 0 : index
    %7 = vector.load %arg4[%c0_5, %c0_6] : memref<128x128xf32, #tpu.memory_space<vmem>>, vector<128x128xf32>
    %cst_7 = arith.constant dense<0.000000e+00> : vector<2x128xf32>
    %8 = tpu.matmul %6, %7, %cst_7 {dimension_numbers = #tpu.dot_dimension_numbers<[1], [0], [0], [1], [0, 0, 1, 1], [], []>} : vector<2x128xf32>, vector<128x128xf32>, vector<2x128xf32> -> vector<2x128xf32>
    %c0_8 = arith.constant 0 : index
    %c0_9 = arith.constant 0 : index
    %9 = vector.load %arg5[%c0_8, %c0_9] : memref<1x128xf32, #tpu.memory_space<vmem>>, vector<1x128xf32>
    %10 = vector.broadcast %9 : vector<1x128xf32> to vector<2x128xf32>
    %11 = arith.addf %8, %10 : vector<2x128xf32>
    %cst_10 = arith.constant dense<0xFF800000> : vector<2xf32>
    %12 = vector.multi_reduction <maximumf>, %11, %cst_10 [1] : vector<2x128xf32> to vector<2xf32>
    %13 = vector.shape_cast %12 : vector<2xf32> to vector<2x1xf32>
    %14 = vector.broadcast %13 : vector<2x1xf32> to vector<2x128xf32>
    %15 = arith.subf %11, %14 : vector<2x128xf32>
    %16 = math.exp %15 : vector<2x128xf32>
    %cst_11 = arith.constant dense<0.000000e+00> : vector<2xf32>
    %17 = vector.multi_reduction <add>, %16, %cst_11 [1] : vector<2x128xf32> to vector<2xf32>
    %18 = vector.shape_cast %17 : vector<2xf32> to vector<2x1xf32>
    %19 = math.log %18 : vector<2x1xf32>
    %20 = vector.broadcast %19 : vector<2x1xf32> to vector<2x128xf32>
    %21 = arith.subf %15, %20 : vector<2x128xf32>
    %c0_12 = arith.constant 0 : index
    %c0_13 = arith.constant 0 : index
    %22 = vector.load %arg6[%c0_12, %c0_13] : memref<2x128xf32, #tpu.memory_space<vmem>>, vector<2x128xf32>
    tpu.vector_store %arg6[%c0_12, %c0_13], %21 {strides = array<i32>} : memref<2x128xf32, #tpu.memory_space<vmem>>, vector<2x128xf32>,
    return
  }
  func.func @transform_0(%arg0: i32) -> (i32, i32) {
    %c0_i32 = arith.constant 0 : i32
    %c0_i32_0 = arith.constant 0 : i32
    return %arg0, %c0_i32 : i32, i32
  }
  func.func @transform_1(%arg0: i32) -> (i32, i32) {
    %c0_i32 = arith.constant 0 : i32
    %c0_i32_0 = arith.constant 0 : i32
    %c0_i32_1 = arith.constant 0 : i32
    return %c0_i32, %c0_i32_0 : i32, i32
  }
  func.func @transform_2(%arg0: i32) -> (i32, i32) {
    %c0_i32 = arith.constant 0 : i32
    %c0_i32_0 = arith.constant 0 : i32
    %c0_i32_1 = arith.constant 0 : i32
    return %c0_i32, %c0_i32_0 : i32, i32
  }
  func.func @transform_3(%arg0: i32) -> (i32, i32) {
    %c0_i32 = arith.constant 0 : i32
    %c0_i32_0 = arith.constant 0 : i32
    %c0_i32_1 = arith.constant 0 : i32
    return %c0_i32, %c0_i32_0 : i32, i32
  }
  func.func @transform_4(%arg0: i32) -> (i32, i32) {
    %c0_i32 = arith.constant 0 : i32
    %c0_i32_0 = arith.constant 0 : i32
    %c0_i32_1 = arith.constant 0 : i32
    return %c0_i32, %c0_i32_0 : i32, i32
  }
  func.func @transform_5(%arg0: i32) -> (i32, i32) {
    %c0_i32 = arith.constant 0 : i32
    %c0_i32_0 = arith.constant 0 : i32
    return %arg0, %c0_i32 : i32, i32
  }
}

</mosaic_0001>

<bundles_post_ra>
// kernel: tpu_custom_call.1
= control target key start
LH: loop header
LB: loop body
LE: loop exit
PB: predicated region body
PF: predicated region fallthrough
CT: control target
= control target key end

     0   :  { %10 = vsyncpa [#allocation3], 0  ;;  %s976_s0 = inlined_call_operand.hbm [shape: f32[2,784], index: 0, kind: input, shape index: {}]   ;;  %s977_s1 = inlined_call_operand.hbm [shape: f32[784,128], index: 1, kind: input, shape index: {}]   ;;  %s978_s2 = inlined_call_operand.vmem [shape: f32[1,128], index: 2, kind: input, shape index: {}]   ;;  %s979_s3 = inlined_call_operand.hbm [shape: f32[128,128], index: 3, kind: input, shape index: {}]   ;;  %s980_s4 = inlined_call_operand.vmem [shape: f32[1,128], index: 4, kind: input, shape index: {}]   ;;  %s981_s5 = inlined_call_operand.hbm [shape: f32[2,128], index: 5, kind: output, shape index: {}]  }
   0x1   :  { %11 = vsyncpa [#allocation6], 0 }
   0x2   :  { %12 = vsyncpa [#allocation4], 0  ;;  %s888_s18 = smov [#allocation5]  }
   0x3   :  { %s28_s19 = sshll.u32 %s888_s18, 4  ;;  %s29_s19 = int_to_ptr.vmem [resolvable:$true] %s28_s19 }
   0x4   :  { %s810_s20 = scalar_lea.vmem %s29_s19, 12544  ;;  %p815_p1 = scmp.lt.s32.totalorder %s29_s19, %s29_s19 }
   0x5   :  { %p811_p0 = scmp.ne.s32.totalorder %s29_s19, %s810_s20  ;;  %p816_p2 = scmp.lt.s32.totalorder %s810_s20, %s810_s20 }
   0x7   :  { %p817_p3 = por %p816_p2, %p815_p1 }
   0x9   :  { %p818_p4 = pnand %p817_p3, %p811_p0 }
   0xb   :  { %821 = shalt.err (!%p818_p4)
}
   0xc   :  { %s889_s21 = smov 128   ;;  %s890_s22 = smov 8  }
   0xd   :  { %34 = dma.hbm_to_vmem [thread:$0]  %s977_s1, 12544, %s29_s19, [#allocation6], %s889_s21, %s889_s21, %s890_s22  }
   0xe   :  { %s891_s25 = smov [#allocation2]   ;;  %s892_s27 = smov [#allocation7]  }
   0xf   :  { %s19_s26 = sshll.u32 %s891_s25, 4  ;;  %s42_s28 = sshll.u32 %s892_s27, 4  ;;  %s20_s26 = int_to_ptr.vmem [resolvable:$true] %s19_s26  ;;  %s43_s28 = int_to_ptr.vmem [resolvable:$true] %s42_s28 }
  0x10   :  { %s830_s29 = scalar_lea.vmem %s20_s26, 224  ;;  %p835_p6 = scmp.lt.s32.totalorder %s20_s26, %s20_s26 }
  0x11   :  { %p831_p5 = scmp.ne.s32.totalorder %s20_s26, %s830_s29  ;;  %p836_p7 = scmp.lt.s32.totalorder %s830_s29, %s830_s29 }
  0x13   :  { %p837_p8 = por %p836_p7, %p835_p6 }
  0x15   :  { %p838_p9 = pnand %p837_p8, %p831_p5 }
  0x17   :  { %841 = shalt.err (!%p838_p9)
}
  0x18   :  { %22 = dma.hbm_to_vmem [thread:$0]  %s976_s0, 224, %s20_s26, [#allocation3]  }
  0x19   :  { %s850_s7 = scalar_lea.vmem %s43_s28, 2048  ;;  %p855_p11 = scmp.lt.s32.totalorder %s43_s28, %s43_s28 }
  0x1a   :  { %p851_p10 = scmp.ne.s32.totalorder %s43_s28, %s850_s7  ;;  %p856_p12 = scmp.lt.s32.totalorder %s850_s7, %s850_s7 }
  0x1c   :  { %p857_p13 = por %p856_p12, %p855_p11 }
  0x1e   :  { %p858_p0 = pnand %p857_p13, %p851_p10 }
  0x20   :  { %861 = shalt.err (!%p858_p0)
}
  0x21   :  { %48 = dma.hbm_to_vmem [thread:$0]  %s979_s3, 2048, %s43_s28, [#allocation6], %s889_s21, %s889_s21, %s890_s22  }
  0x22   :  { %882 = dma.done.wait [#allocation3], 224  }
  0x23   :  { %883 = vsyncadd [#allocation3], 4294967072 }
  0x24   :  { %884 = dma.done.wait [#allocation6], 14592  }
  0x25   :  { %885 = vsyncadd [#allocation6], 4294952704  ;;  %v93_v0 = vld [vmem:[#allocation5 + $0xf8] sm:$0xff]  ;;  %v92_v2 = vld [vmem:[#allocation5 + $0xf0] sm:$0xff]  ;;  %v893_v27 = vmov 1983009808   ;;  %v173_v29 = vlaneseq }
  0x26   :  { %v77_v1 = vld [vmem:[#allocation5 + $0x78] sm:$0xff]  ;;  %618 = vmatprep.subr.mxu0 %v93_v0  ;;  %v76_v4 = vld [vmem:[#allocation5 + $0x70] sm:$0xff]  ;;  %v91_v6 = vld [vmem:[#allocation5 + $0xe8] sm:$0xff]  ;;  %v171_v28 = vunpack.c.l.s4 %v893_v27  ;;  %vm208_vm0 = vcmask 130048   ;;  %vm895_vm1 = vmmov 0   ;;  %vm585_vm2 = vcmask 1041408  }
  0x27   :  { %v125_v3 = vld [vmem:[#allocation5 + $0x1f8] sm:$0xff]  ;;  %619 = vmatpush3.msra.mxu0 %v77_v1  ;;  %v124_v7 = vld [vmem:[#allocation5 + $0x1f0] sm:$0xff]  ;;  %v75_v8 = vld [vmem:[#allocation5 + $0x68] sm:$0xff]  ;;  %v174_v39 = vshrl.u32 %v173_v29, 7 }
  0x28   :  { %v109_v5 = vld [vmem:[#allocation5 + $0x178] sm:$0xff]  ;;  %653 = vmatprep.subr.mxu1 %v125_v3  ;;  %620 = vmatprep.subr.mxu0 %v92_v2  ;;  %v108_v9 = vld [vmem:[#allocation5 + $0x170] sm:$0xff]  ;;  %v123_v10 = vld [vmem:[#allocation5 + $0x1e8] sm:$0xff]  ;;  %v172_v38 = vunpack.c.0.s8 %v171_v28 }
  0x29   :  { %654 = vmatpush3.msra.mxu1 %v109_v5  ;;  %621 = vmatpush3.msra.mxu0 %v76_v4  ;;  %v90_v11 = vld [vmem:[#allocation5 + $0xe0] sm:$0xff]  ;;  %v107_v12 = vld [vmem:[#allocation5 + $0x168] sm:$0xff]  ;;  %v89_v15 = vld [vmem:[#allocation5 + $0xd8] sm:$0xff] }
  0x2a   :  { %655 = vmatprep.subr.mxu1 %v124_v7  ;;  %622 = vmatprep.subr.mxu0 %v91_v6  ;;  %v74_v13 = vld [vmem:[#allocation5 + $0x60] sm:$0xff]  ;;  %v73_v17 = vld [vmem:[#allocation5 + $0x58] sm:$0xff]  ;;  %v88_v19 = vld [vmem:[#allocation5 + $0xd0] sm:$0xff]  ;;  %v936_v48 = vsub.s32 %v172_v38, %v174_v39 }
  0x2b   :  { %656 = vmatpush3.msra.mxu1 %v108_v9  ;;  %v122_v14 = vld [vmem:[#allocation5 + $0x1e0] sm:$0xff]  ;;  %623 = vmatpush3.msra.mxu0 %v75_v8  ;;  %v121_v18 = vld [vmem:[#allocation5 + $0x1d8] sm:$0xff]  ;;  %v72_v21 = vld [vmem:[#allocation5 + $0x50] sm:$0xff] }
  0x2c   :  { %657 = vmatprep.subr.mxu1 %v123_v10  ;;  %v106_v16 = vld [vmem:[#allocation5 + $0x160] sm:$0xff]  ;;  %624 = vmatprep.subr.mxu0 %v90_v11  ;;  %v105_v20 = vld [vmem:[#allocation5 + $0x158] sm:$0xff]  ;;  %v120_v22 = vld [vmem:[#allocation5 + $0x1d0] sm:$0xff] }
  0x2d   :  { %658 = vmatpush3.msra.mxu1 %v107_v12  ;;  %625 = vmatpush3.msra.mxu0 %v74_v13  ;;  %v87_v23 = vld [vmem:[#allocation5 + $0xc8] sm:$0xff]  ;;  %v104_v24 = vld [vmem:[#allocation5 + $0x150] sm:$0xff]  ;;  %v86_v30 = vld [vmem:[#allocation5 + $0xc0] sm:$0xff] }
  0x2e   :  { %659 = vmatprep.subr.mxu1 %v122_v14  ;;  %626 = vmatprep.subr.mxu0 %v89_v15  ;;  %v71_v25 = vld [vmem:[#allocation5 + $0x48] sm:$0xff]  ;;  %v70_v32 = vld [vmem:[#allocation5 + $0x40] sm:$0xff]  ;;  %v85_v34 = vld [vmem:[#allocation5 + $0xb8] sm:$0xff] }
  0x2f   :  { %660 = vmatpush3.msra.mxu1 %v106_v16  ;;  %627 = vmatpush3.msra.mxu0 %v73_v17  ;;  %v119_v26 = vld [vmem:[#allocation5 + $0x1c8] sm:$0xff]  ;;  %v118_v33 = vld [vmem:[#allocation5 + $0x1c0] sm:$0xff]  ;;  %v69_v36 = vld [vmem:[#allocation5 + $0x38] sm:$0xff] }
  0x30   :  { %661 = vmatprep.subr.mxu1 %v121_v18  ;;  %628 = vmatprep.subr.mxu0 %v88_v19  ;;  %v103_v31 = vld [vmem:[#allocation5 + $0x148] sm:$0xff]  ;;  %v102_v35 = vld [vmem:[#allocation5 + $0x140] sm:$0xff]  ;;  %v117_v37 = vld [vmem:[#allocation5 + $0x1b8] sm:$0xff] }
  0x31   :  { %662 = vmatpush3.msra.mxu1 %v105_v20  ;;  %629 = vmatpush3.msra.mxu0 %v72_v21  ;;  %v84_v40 = vld [vmem:[#allocation5 + $0xb0] sm:$0xff]  ;;  %v101_v41 = vld [vmem:[#allocation5 + $0x138] sm:$0xff]  ;;  %v83_v44 = vld [vmem:[#allocation5 + $0xa8] sm:$0xff] }
  0x32   :  { %663 = vmatprep.subr.mxu1 %v120_v22  ;;  %630 = vmatprep.subr.mxu0 %v87_v23  ;;  %v68_v42 = vld [vmem:[#allocation5 + $0x30] sm:$0xff]  ;;  %v67_v46 = vld [vmem:[#allocation5 + $0x28] sm:$0xff]  ;;  %v82_v49 = vld [vmem:[#allocation5 + $0xa0] sm:$0xff] }
  0x33   :  { %664 = vmatpush3.msra.mxu1 %v104_v24  ;;  %631 = vmatpush3.msra.mxu0 %v71_v25  ;;  %v116_v43 = vld [vmem:[#allocation5 + $0x1b0] sm:$0xff]  ;;  %v115_v47 = vld [vmem:[#allocation5 + $0x1a8] sm:$0xff]  ;;  %v66_v52 = vld [vmem:[#allocation5 + $0x20] sm:$0xff]  ;;  %v894_v25 = vmov 0.0  }
  0x34   :  { %665 = vmatprep.subr.mxu1 %v119_v26  ;;  %632 = vmatprep.subr.mxu0 %v86_v30  ;;  %v100_v45 = vld [vmem:[#allocation5 + $0x130] sm:$0xff]  ;;  %v99_v50 = vld [vmem:[#allocation5 + $0x128] sm:$0xff]  ;;  %v114_v53 = vld [vmem:[#allocation5 + $0x1a0] sm:$0xff] }
  0x35   :  { %666 = vmatpush3.msra.mxu1 %v103_v31  ;;  %633 = vmatpush3.msra.mxu0 %v70_v32  ;;  %v60_v51 = vld [vmem:[#allocation2] sm:$0xff]  ;;  %v98_v55 = vld [vmem:[#allocation5 + $0x120] sm:$0xff]  ;;  %v79_v0 = vld [vmem:[#allocation5 + $0x88] sm:$0xff] }
  0x36   :  { %667 = vmatprep.subr.mxu1 %v118_v33  ;;  %634 = vmatprep.subr.mxu0 %v85_v34  ;;  %v81_v54 = vld [vmem:[#allocation5 + $0x98] sm:$0xff]  ;;  %v176_v58 = vrot.slane %v60_v51, %v936_v48  ;;  %v169_v59 = vcombine.high %v60_v51, %v60_v51  ;;  %v80_v60 = vld [vmem:[#allocation5 + $0x90] sm:$0xff]  ;;  %v63_v2 = vld [vmem:[#allocation5 + $0x8] sm:$0xff] }
  0x37   :  { %668 = vmatpush3.msra.mxu1 %v102_v35  ;;  %635 = vmatpush3.msra.mxu0 %v69_v36  ;;  %v65_v56 = vld [vmem:[#allocation5 + $0x18] sm:$0xff]  ;;  %v64_v62 = vld [vmem:[#allocation5 + $0x10] sm:$0xff]  ;;  %v111_v3 = vld [vmem:[#allocation5 + $0x188] sm:$0xff] }
  0x38   :  { %669 = vmatprep.subr.mxu1 %v117_v37  ;;  %636 = vmatprep.subr.mxu0 %v84_v40  ;;  %v113_v57 = vld [vmem:[#allocation5 + $0x198] sm:$0xff]  ;;  %v112_v63 = vld [vmem:[#allocation5 + $0x190] sm:$0xff]  ;;  %v184_v4 = vcombine.high %v176_v58, %v176_v58  ;;  %v183_v5 = vrot.slane %v169_v59, %v936_v48  ;;  %v78_v6 = vld [vmem:[#allocation5 + $0x80] sm:$0xff] }
  0x39   :  { %670 = vmatpush3.msra.mxu1 %v101_v41  ;;  %637 = vmatpush3.msra.mxu0 %v68_v42  ;;  %v97_v61 = vld [vmem:[#allocation5 + $0x118] sm:$0xff]  ;;  %v96_v1 = vld [vmem:[#allocation5 + $0x110] sm:$0xff]  ;;  %v62_v7 = vld [vmem:[#allocation5] sm:$0xff] }
  0x3a   :  { %671 = vmatprep.subr.mxu1 %v116_v43  ;;  %638 = vmatprep.subr.mxu0 %v83_v44  ;;  %v95_v8 = vld [vmem:[#allocation5 + $0x108] sm:$0xff]  ;;  %v110_v9 = vld [vmem:[#allocation5 + $0x180] sm:$0xff]  ;;  %v157_v10 = vld [vmem:[#allocation5 + $0x2f8] sm:$0xff]  ;;  %v185_v12 = vcombine.high %v183_v5, %v183_v5 }
  0x3b   :  { %672 = vmatpush3.msra.mxu1 %v100_v45  ;;  %639 = vmatpush3.msra.mxu0 %v67_v46  ;;  %v94_v11 = vld [vmem:[#allocation5 + $0x100] sm:$0xff]  ;;  %v141_v13 = vld [vmem:[#allocation5 + $0x278] sm:$0xff]  ;;  %v156_v15 = vld [vmem:[#allocation5 + $0x2f0] sm:$0xff] }
  0x3c   :  { %673 = vmatprep.subr.mxu1 %v115_v47  ;;  %640 = vmatprep.subr.mxu0 %v82_v49  ;;  %v61_v14 = vld [vmem:[#allocation2 + $0x8] sm:$0x3f]  ;;  %v140_v17 = vld [vmem:[#allocation5 + $0x270] sm:$0xff]  ;;  %v155_v18 = vld [vmem:[#allocation5 + $0x2e8] sm:$0xff] }
  0x3d   :  { %674 = vmatpush3.msra.mxu1 %v99_v50  ;;  %641 = vmatpush3.msra.mxu0 %v66_v52  ;;  %v941_v16 = vrot.slane %v61_v14, %v936_v48  ;;  %v186_v19 = vcombine.high %v61_v14, %v61_v14  ;;  %v139_v21 = vld [vmem:[#allocation5 + $0x268] sm:$0xff]  ;;  %v154_v23 = vld [vmem:[#allocation5 + $0x2e0] sm:$0xff]  ;;  %v153_v27 = vld [vmem:[#allocation5 + $0x2d8] sm:$0xff] }
  0x3e   :  { %675 = vmatprep.subr.mxu1 %v114_v53  ;;  %642 = vmatprep.subr.mxu0 %v81_v54  ;;  %v159_v22 = vld [vmem:[#allocation5 + $0x308] sm:$0xff]  ;;  %v138_v24 = vld [vmem:[#allocation5 + $0x260] sm:$0xff]  ;;  %v137_v29 = vld [vmem:[#allocation5 + $0x258] sm:$0xff] }
  0x3f   :  { %676 = vmatpush3.msra.mxu1 %v98_v55  ;;  %643 = vmatpush3.msra.mxu0 %v65_v56  ;;  %v201_v20 = vcombine.high %v941_v16, %v941_v16  ;;  %v158_v26 = vld [vmem:[#allocation5 + $0x300] sm:$0xff]  ;;  %v200_v28 = vrot.slane %v186_v19, %v936_v48  ;;  %v152_v30 = vld [vmem:[#allocation5 + $0x2d0] sm:$0xff]  ;;  %v151_v32 = vld [vmem:[#allocation5 + $0x2c8] sm:$0xff] }
  0x40   :  { %677 = vmatprep.subr.mxu1 %v113_v57  ;;  %644 = vmatprep.subr.mxu0 %v80_v60  ;;  %v136_v31 = vld [vmem:[#allocation5 + $0x250] sm:$0xff]  ;;  %v135_v33 = vld [vmem:[#allocation5 + $0x248] sm:$0xff]  ;;  %v150_v34 = vld [vmem:[#allocation5 + $0x2c0] sm:$0xff] }
  0x41   :  { %678 = vmatpush3.msra.mxu1 %v97_v61  ;;  %645 = vmatpush3.msra.mxu0 %v64_v62  ;;  %v134_v35 = vld [vmem:[#allocation5 + $0x240] sm:$0xff]  ;;  %v149_v36 = vld [vmem:[#allocation5 + $0x2b8] sm:$0xff]  ;;  %v148_v38 = vld [vmem:[#allocation5 + $0x2b0] sm:$0xff] }
  0x42   :  { %679 = vmatprep.subr.mxu1 %v112_v63  ;;  %646 = vmatprep.subr.mxu0 %v79_v0  ;;  %v133_v37 = vld [vmem:[#allocation5 + $0x238] sm:$0xff]  ;;  %v132_v39 = vld [vmem:[#allocation5 + $0x230] sm:$0xff]  ;;  %v147_v40 = vld [vmem:[#allocation5 + $0x2a8] sm:$0xff] }
  0x43   :  { %680 = vmatpush3.msra.mxu1 %v96_v1  ;;  %647 = vmatpush3.msra.mxu0 %v63_v2  ;;  %v131_v41 = vld [vmem:[#allocation5 + $0x228] sm:$0xff]  ;;  %v146_v42 = vld [vmem:[#allocation5 + $0x2a0] sm:$0xff]  ;;  %v145_v44 = vld [vmem:[#allocation5 + $0x298] sm:$0xff] }
  0x44   :  { %681 = vmatprep.subr.mxu1 %v111_v3  ;;  %648 = vmatprep.subr.mxu0 %v78_v6  ;;  %v130_v43 = vld [vmem:[#allocation5 + $0x220] sm:$0xff]  ;;  %v129_v45 = vld [vmem:[#allocation5 + $0x218] sm:$0xff]  ;;  %v144_v46 = vld [vmem:[#allocation5 + $0x290] sm:$0xff] }
  0x45   :  { %275 = vmatprep.mubr.f32.mxu0 %v184_v4  ;;  %649 = vmatpush3.msra.mxu0 %v62_v7  ;;  %v128_v47 = vld [vmem:[#allocation5 + $0x210] sm:$0xff]  ;;  %v143_v48 = vld [vmem:[#allocation5 + $0x288] sm:$0xff]  ;;  %v142_v50 = vld [vmem:[#allocation5 + $0x280] sm:$0xff] }
  0x46   :  { %682 = vmatpush3.msra.mxu1 %v95_v8  ;;  %276 = vmatmul.mubr.f32.vlgmr.msra.gmra.mxu0 %v176_v58  ;;  %v127_v49 = vld [vmem:[#allocation5 + $0x208] sm:$0xff]  ;;  %v126_v51 = vld [vmem:[#allocation5 + $0x200] sm:$0xff]  ;;  %v505_v54 = vld [vmem:[#allocation7 + $0x68] sm:$0xff] }
  0x47   :  { %683 = vmatprep.subr.mxu1 %v110_v9  ;;  %688 = vmatprep.subr.mxu0 %v157_v10  ;;  %v507_v52 = vld [vmem:[#allocation7 + $0x78] sm:$0xff]  ;;  %v506_v53 = vld [vmem:[#allocation7 + $0x70] sm:$0xff]  ;;  %v504_v55 = vld [vmem:[#allocation7 + $0x60] sm:$0xff] }
  0x48   :  { %684 = vmatpush3.msra.mxu1 %v94_v11  ;;  %345 = vmatprep.mubr.f32.mxu1 %v185_v12  ;;  %v503_v56 = vld [vmem:[#allocation7 + $0x58] sm:$0xff]  ;;  %v502_v57 = vld [vmem:[#allocation7 + $0x50] sm:$0xff]  ;;  %v501_v58 = vld [vmem:[#allocation7 + $0x48] sm:$0xff] }
  0x49   :  { %689 = vmatpush3.msra.mxu0 %v141_v13  ;;  %346 = vmatmul.mubr.f32.vlgmr.msra.gmra.mxu1 %v183_v5  ;;  %v500_v59 = vld [vmem:[#allocation7 + $0x40] sm:$0xff]  ;;  %v499_v60 = vld [vmem:[#allocation7 + $0x38] sm:$0xff]  ;;  %v498_v61 = vld [vmem:[#allocation7 + $0x30] sm:$0xff] }
  0x4a   :  { %690 = vmatprep.subr.mxu0 %v156_v15  ;;  %415 = vmatprep.mubr.f32.mxu0 %v201_v20  ;;  %v497_v62 = vld [vmem:[#allocation7 + $0x28] sm:$0xff]  ;;  %v496_v63 = vld [vmem:[#allocation7 + $0x20] sm:$0xff]  ;;  %v495_v0 = vld [vmem:[#allocation7 + $0x18] sm:$0xff] }
  0x4b   :  { %691 = vmatpush3.msra.mxu0 %v140_v17  ;;  %743 = vmatprep.subr.mxu1 %v894_v25  ;;  %v494_v1 = vld [vmem:[#allocation7 + $0x10] sm:$0xff]  ;;  %v493_v2 = vld [vmem:[#allocation7 + $0x8] sm:$0xff]  ;;  %v492_v3 = vld [vmem:[#allocation7] sm:$0xff] }
  0x4c   :  { %692 = vmatprep.subr.mxu0 %v155_v18  ;;  %744 = vmatpush3.msra.mxu1 %v159_v22  ;;  %v615_v11 = vld [vmem:[%s978_s2] ss:$0 sm:$0xff]  ;;  %s896_s2 = smov [#allocation8]  }
  0x4d   :  { %693 = vmatpush3.msra.mxu0 %v139_v21  ;;  %745 = vmatprep.subr.mxu1 %v894_v25  ;;  %v617_v21 = vld [vmem:[%s980_s4] ss:$0 sm:$0xff]  ;;  %s605_s11 = sshll.u32 %s896_s2, 4  ;;  %s606_s11 = int_to_ptr.vmem [resolvable:$true] %s605_s11 }
  0x4e   :  { %694 = vmatprep.subr.mxu0 %v154_v23  ;;  %746 = vmatpush3.msra.mxu1 %v158_v26  ;;  %s862_s4 = scalar_lea.vmem %s606_s11, 32  ;;  %p867_p2 = scmp.lt.s32.totalorder %s606_s11, %s606_s11 }
  0x4f   :  { %695 = vmatpush3.msra.mxu0 %v138_v24  ;;  %747 = vmatprep.mubr.msk.f32.mxu1 %vm895_vm1, %v894_v25  ;;  %p863_p1 = scmp.ne.s32.totalorder %s606_s11, %s862_s4  ;;  %p868_p3 = scmp.lt.s32.totalorder %s862_s4, %s862_s4 }
  0x50   :  { %696 = vmatprep.subr.mxu0 %v153_v27  ;;  %748 = vmatmul.mubr.msk.f32.vlgmr.msra.gmra.mxu1 %vm208_vm0, %v200_v28 }
  0x51   :  { %697 = vmatpush3.msra.mxu0 %v137_v29  ;;  %750 = vmatprep.subr.mxu1 %v894_v25  ;;  %p869_p4 = por %p868_p3, %p867_p2 }
  0x52   :  { %698 = vmatprep.subr.mxu0 %v152_v30  ;;  %782 = vmatprep.mubr.msk.f32.mxu1 %vm895_vm1, %v894_v25 }
  0x53   :  { %699 = vmatpush3.msra.mxu0 %v136_v31  ;;  %751 = vmatpush3.msra.mxu1 %v507_v52  ;;  %p870_p5 = pnand %p869_p4, %p863_p1 }
  0x54   :  { %700 = vmatprep.subr.mxu0 %v151_v32  ;;  %752 = vmatprep.subr.mxu1 %v894_v25 }
  0x55   :  { %701 = vmatpush3.msra.mxu0 %v135_v33  ;;  %753 = vmatpush3.msra.mxu1 %v506_v53 }
  0x56   :  { %702 = vmatprep.subr.mxu0 %v150_v34  ;;  %754 = vmatprep.subr.mxu1 %v894_v25 }
  0x57   :  { %703 = vmatpush3.msra.mxu0 %v134_v35  ;;  %755 = vmatpush3.msra.mxu1 %v505_v54 }
  0x58   :  { %704 = vmatprep.subr.mxu0 %v149_v36  ;;  %756 = vmatprep.subr.mxu1 %v894_v25 }
  0x59   :  { %705 = vmatpush3.msra.mxu0 %v133_v37  ;;  %757 = vmatpush3.msra.mxu1 %v504_v55 }
  0x5a   :  { %706 = vmatprep.subr.mxu0 %v148_v38  ;;  %758 = vmatprep.subr.mxu1 %v894_v25 }
  0x5b   :  { %707 = vmatpush3.msra.mxu0 %v132_v39  ;;  %759 = vmatpush3.msra.mxu1 %v503_v56 }
  0x5c   :  { %708 = vmatprep.subr.mxu0 %v147_v40  ;;  %760 = vmatprep.subr.mxu1 %v894_v25 }
  0x5d   :  { %709 = vmatpush3.msra.mxu0 %v131_v41  ;;  %761 = vmatpush3.msra.mxu1 %v502_v57 }
  0x5e   :  { %710 = vmatprep.subr.mxu0 %v146_v42  ;;  %762 = vmatprep.subr.mxu1 %v894_v25 }
  0x5f   :  { %711 = vmatpush3.msra.mxu0 %v130_v43  ;;  %763 = vmatpush3.msra.mxu1 %v501_v58 }
  0x60   :  { %712 = vmatprep.subr.mxu0 %v145_v44  ;;  %764 = vmatprep.subr.mxu1 %v894_v25 }
  0x61   :  { %713 = vmatpush3.msra.mxu0 %v129_v45  ;;  %765 = vmatpush3.msra.mxu1 %v500_v59 }
  0x62   :  { %714 = vmatprep.subr.mxu0 %v144_v46  ;;  %766 = vmatprep.subr.mxu1 %v894_v25 }
  0x63   :  { %715 = vmatpush3.msra.mxu0 %v128_v47  ;;  %767 = vmatpush3.msra.mxu1 %v499_v60 }
  0x64   :  { %716 = vmatprep.subr.mxu0 %v143_v48  ;;  %768 = vmatprep.subr.mxu1 %v894_v25 }
  0x65   :  { %717 = vmatpush3.msra.mxu0 %v127_v49  ;;  %769 = vmatpush3.msra.mxu1 %v498_v61 }
  0x66   :  { %718 = vmatprep.subr.mxu0 %v142_v50  ;;  %770 = vmatprep.subr.mxu1 %v894_v25 }
  0x67   :  { %719 = vmatpush3.msra.mxu0 %v126_v51  ;;  %771 = vmatpush3.msra.mxu1 %v497_v62 }
  0x68   :  { %416 = vmatmul.mubr.f32.vlgmr.msra.gmra.mxu0 %v941_v16  ;;  %772 = vmatprep.subr.mxu1 %v894_v25 }
  0x69   :  { %773 = vmatpush3.msra.mxu1 %v496_v63 }
  0x6a   :  { %774 = vmatprep.subr.mxu1 %v894_v25 }
  0x6b   :  { %775 = vmatpush3.msra.mxu1 %v495_v0 }
  0x6c   :  { %776 = vmatprep.subr.mxu1 %v894_v25 }
  0x6d   :  { %777 = vmatpush3.msra.mxu1 %v494_v1 }
  0x6e   :  { %778 = vmatprep.subr.mxu1 %v894_v25 }
  0x6f   :  { %779 = vmatpush3.msra.mxu1 %v493_v2 }
  0x70   :  { %780 = vmatprep.subr.mxu1 %v894_v25 }
  0x71   :  { %781 = vmatpush3.msra.mxu1 %v492_v3 }
 0x106   :  { %v650_v8 = vpop.f32.mrf.mxu0 }
 0x108   :  { %v651_v9 = vpop.f32.mrf.mxu0 }
 0x109   :  { %v685_v4 = vpop.f32.mrf.mxu1  ;;  %v652_v10 = vadd.f32 %v651_v9, %v650_v8 }
 0x10b   :  { %v686_v5 = vpop.f32.mrf.mxu1  ;;  %v278_v12 = vadd.f32 %v652_v10, %v615_v11 }
 0x10c   :  { %v687_v13 = vadd.f32 %v686_v5, %v685_v4 }
 0x10e   :  { %v348_v16 = vadd.f32 %v687_v13, %v278_v12 }
 0x110   :  { %v487_v6 = vpop.f32.mrf.mxu1 }
 0x112   :  { %v749_v7 = vpop.f32.mrf.mxu1 }
 0x128   :  { %v720_v14 = vpop.f32.mrf.mxu0 }
 0x12a   :  { %v721_v15 = vpop.f32.mrf.mxu0 }
 0x12b   :  { %v722_v17 = vadd.f32 %v721_v15, %v720_v14 }
 0x12d   :  { %v418_v18 = vadd.f32 %v722_v17, %v348_v16 }
 0x12f   :  { %v488_v19 = vadd.f32 %v487_v6, %v418_v18 }
 0x131   :  { %796 = vtanh.f32 %v488_v19 }
 0x13e   :  { %v797_v20 = vpop.eup %796 }
 0x13f   :  { %783 = vmatmul.mubr.f32.vlgmr.msra.gmra.mxu1 %v797_v20 }
 0x1ff   :  { %v581_v22 = vpop.f32.mrf.mxu1 }
 0x200   :  { %v582_v23 = vadd.f32 %v617_v21, %v581_v22 }
 0x201   :  { %v784_v24 = vpop.f32.mrf.mxu1 }
 0x202   :  { %v586_v25 = vsel %vm585_vm2, %v582_v23, -inf }
 0x203   :  { %587 = vmax.xlane.f32.xlu0 %v586_v25 }
 0x28c   :  { %v588_v26 = vpop.xlane.xlu0 %587 }
 0x28d   :  { %v589_v27 = vsub.f32 %v582_v23, %v588_v26 }
 0x28f   :  { %v590_v28 = vmul.f32 1.442695, %v589_v27 }
 0x291   :  { %798 = vpow2.f32 %v590_v28 }
 0x29e   :  { %v799_v29 = vpop.eup %798 }
 0x29f   :  { %v592_v30 = vsel %vm585_vm2, %v799_v29, 0.0 }
 0x2a0   :  { %593 = vadd.xlane.f32.xlu0 %v592_v30 }
 0x329   :  { %v594_v31 = vpop.xlane.xlu0 %593 }
 0x32a   :  { %800 = vlog2.f32 %v594_v31 }
 0x337   :  { %v801_v32 = vpop.eup %800 }
 0x338   :  { %v596_v33 = vmul.f32 0.6931472, %v801_v32 }
 0x33a   :  { %v597_v34 = vsub.f32 %v589_v27, %v596_v33 }
 0x33c   :  { %598 = vst [vmem:[#allocation8] sm:$0x3] %v597_v34 }
 0x33d   :  { %873 = shalt.err (!%p870_p5)
}
 0x33e   :  { %608 = dma.vmem_to_hbm [thread:$0]  %s606_s11, 32, %s981_s5, [#allocation4]  }
 0x33f   :  { %886 = dma.done.wait [#allocation4], 32  }
 0x340   :  { %887 = vsyncadd [#allocation4], 4294967264 }
 0x341   :  { %612 = vsyncpa [#allocation3], 1 }
 0x342   :  { %613 = vsyncpa [#allocation6], 1 }
 0x343   :  { %614 = vsyncpa [#allocation4], 1 }

</bundles_post_ra>
